<compile_context>
chip_gen: v5e
topology: v5e:2x2
jax: 0.10.0
libtpu: 0.0.40
codegen_flags: <defaults>
</compile_context>

<pallas_src>
import jax
import jax.numpy as jnp
from jax import lax
from jax.experimental import pallas as pl
from jax.experimental.pallas import tpu as pltpu

_BN_EPS = 1e-5


# ----------------------------------------------------------------------------
# Pallas kernel: fused SODAMLP forward, tiled over the hidden dimension H.
# Per grid step k (hidden tile of width tH):
#   h    = x @ W1[:, k*tH:(k+1)*tH]                       (f32 MXU accum)
#   hn   = (h - mean_B(h)) * (rsqrt(var_B(h)+eps)*gamma) + beta
#   out += relu(hn) @ W2[k*tH:(k+1)*tH, :]                (f32 MXU accum)
# Output block is resident across the grid (same block index every step).
# ----------------------------------------------------------------------------
def soda_mlp_kernel(x_ref, w1_ref, gb_ref, w2_ref, b2_ref, o_ref):
    k = pl.program_id(0)

    @pl.when(k == 0)
    def _():
        o_ref[...] = jnp.zeros_like(o_ref)

    # First matmul: bf16 operands, f32 accumulation on the MXU.
    h = jnp.dot(x_ref[...], w1_ref[...], preferred_element_type=jnp.float32)
    # NOTE: b1 is mathematically dead here — BN subtracts the batch mean, so a
    # constant per-feature pre-BN bias cancels exactly.  It is not an input.

    # BatchNorm1d, training-mode statistics (biased variance over the batch).
    # Stats are per-feature, so they are exact within an H-tile.
    mean = jnp.mean(h, axis=0, keepdims=True)                    # (1, tH)
    centered = h - mean
    var = jnp.mean(centered * centered, axis=0, keepdims=True)   # (1, tH)
    scale = lax.rsqrt(var + _BN_EPS) * gb_ref[0:1, :]            # EUP rsqrt, folded gamma
    hr = jnp.maximum(centered * scale + gb_ref[1:2, :], 0.0)     # BN affine + ReLU

    # Second matmul: accumulate into the resident f32 output block.
    o_ref[...] += jnp.dot(hr.astype(jnp.bfloat16), w2_ref[...],
                          preferred_element_type=jnp.float32)

    @pl.when(k == pl.num_programs(0) - 1)
    def _():
        o_ref[...] += b2_ref[...]


def soda_mlp_forward(x, params, *, tile_h=128):
    """x: (B, proj_dim) f32 encoded features. params: dict of weight arrays."""
    B, d_in = x.shape
    H = params["w1"].shape[1]
    d_out = params["w2"].shape[1]
    if H % tile_h != 0:
        tile_h = H                      # fall back to a single full-H tile
    grid = (H // tile_h,)

    # Cast activations for the MXU once, outside the grid loop (halves x DMA).
    x_bf16 = x.astype(jnp.bfloat16)

    return pl.pallas_call(
        soda_mlp_kernel,
        out_shape=jax.ShapeDtypeStruct((B, d_out), jnp.float32),
        grid_spec=pltpu.PrefetchScalarGridSpec(
            num_scalar_prefetch=0,
            grid=grid,
            in_specs=[
                pl.BlockSpec((B, d_in), lambda k: (0, 0)),        # x (resident)
                pl.BlockSpec((d_in, tile_h), lambda k: (0, k)),   # W1 column tile
                pl.BlockSpec((2, tile_h), lambda k: (0, k)),      # packed [gamma; beta]
                pl.BlockSpec((tile_h, d_out), lambda k: (k, 0)),  # W2 row tile
                pl.BlockSpec((1, d_out), lambda k: (0, 0)),       # b2 (resident)
            ],
            out_specs=pl.BlockSpec((B, d_out), lambda k: (0, 0)),  # accumulator
        ),
        compiler_params=pltpu.CompilerParams(
            dimension_semantics=("arbitrary",),   # reduction axis over H
            # vmem_limit_bytes can be raised here for large B; per-step VMEM is
            # bounded by the H-tiling regardless of hidden_dim.
        ),
    )(x_bf16, params["w1"], params["gb"], params["w2"], params["b2"])


# ----------------------------------------------------------------------------
# SODAPredictor forward:  x -> encoder -> SODAMLP
# ----------------------------------------------------------------------------
def identity_encoder(x):
    # Stand-in for the external encoder module; out_dim == x.shape[1].
    return x


@jax.jit
def soda_predictor_forward(x, mlp_params):
    feats = identity_encoder(x)                 # (B, proj_dim)
    return soda_mlp_forward(feats, mlp_params)  # (B, proj_dim)


# ----------------------------------------------------------------------------
# Parameter construction (mirrors weight_init: orthogonal Linear weights,
# zero biases; BatchNorm gamma=1, beta=0).  Weights stored bf16 for the MXU;
# BN affine and b2 stay f32.
# ----------------------------------------------------------------------------
def _orthogonal(key, rows, cols, gain=1.0):
    """torch.nn.init.orthogonal_-style init for a (rows, cols) weight."""
    transpose = rows < cols
    r_, c_ = (cols, rows) if transpose else (rows, cols)
    a = jax.random.normal(key, (r_, c_), dtype=jnp.float32)
    q, r = jnp.linalg.qr(a)
    d = jnp.diagonal(r)
    q = q * jnp.where(d >= 0, 1.0, -1.0)[None, :]
    if transpose:
        q = q.T
    return gain * q


def make_soda_mlp_params(key, projection_dim, hidden_dim, out_dim):
    k1, k2 = jax.random.split(key, 2)
    # PyTorch Linear stores W as (out, in) and computes x @ W.T; we store the
    # transpose (in, out) so the kernel does x @ W directly.
    w1 = _orthogonal(k1, hidden_dim, projection_dim).T      # (proj, H)
    w2 = _orthogonal(k2, out_dim, hidden_dim).T              # (H, out)
    gamma = jnp.ones((1, hidden_dim), jnp.float32)
    beta = jnp.zeros((1, hidden_dim), jnp.float32)
    # b1 intentionally omitted: zero at init and cancelled by training-mode BN.
    return {
        "w1": w1.astype(jnp.bfloat16),
        "gb": jnp.concatenate([gamma, beta], axis=0),        # (2, H) packed
        "w2": w2.astype(jnp.bfloat16),
        "b2": jnp.zeros((1, out_dim), jnp.float32),
    }


# Pure-JAX f32 reference for a sanity check (same bf16-stored weight values,
# promoted back to f32; the only deltas vs. the kernel are the bf16 casts of
# the activations at the two matmuls).
def _soda_mlp_ref(x, p):
    w1 = p["w1"].astype(jnp.float32)
    w2 = p["w2"].astype(jnp.float32)
    gamma, beta = p["gb"][0:1, :], p["gb"][1:2, :]
    h = x @ w1
    mean = jnp.mean(h, axis=0, keepdims=True)
    var = jnp.mean((h - mean) ** 2, axis=0, keepdims=True)
    hn = (h - mean) / jnp.sqrt(var + _BN_EPS) * gamma + beta
    return jnp.maximum(hn, 0.0) @ w2 + p["b2"]


if __name__ == "__main__":
    key = jax.random.PRNGKey(0)
    k_x, k_p = jax.random.split(key, 2)

    # Small but TPU-friendly shapes: batch multiple of 8, feature dims
    # multiples of 128; hidden_dim = 2 tiles so the H-grid accumulator path
    # (pl.when init / finalize) is actually exercised.
    batch = 8
    proj_dim = 128      # encoder.out_dim
    hidden_dim = 256

    x = jax.random.normal(k_x, (batch, proj_dim), dtype=jnp.float32)
    mlp_params = make_soda_mlp_params(k_p, proj_dim, hidden_dim, proj_dim)

    out = soda_predictor_forward(x, mlp_params)
    out = jax.block_until_ready(out)

    # Correctness check against the pure-JAX f32 reference (tolerance widened
    # for the bf16 activation casts at the MXU inputs).
    ref = _soda_mlp_ref(identity_encoder(x), mlp_params)
    assert out.shape == (batch, proj_dim)
    assert jnp.allclose(out, ref, atol=5e-2, rtol=5e-2), "SODAPredictor mismatch"

    print("KERNEL_OK")
</pallas_src>

<mosaic_0001>
module attributes {stable_mosaic.version = 11 : i64} {
  func.func @soda_mlp_kernel(%arg0: i32, %arg1: memref<8x128xbf16, #tpu.memory_space<vmem>>, %arg2: memref<128x128xbf16, #tpu.memory_space<vmem>>, %arg3: memref<2x128xf32, #tpu.memory_space<vmem>>, %arg4: memref<128x128xbf16, #tpu.memory_space<vmem>>, %arg5: memref<1x128xf32, #tpu.memory_space<vmem>>, %arg6: memref<8x128xf32, #tpu.memory_space<vmem>>) attributes {dimension_semantics = [#tpu.dimension_semantics<arbitrary>], iteration_bounds = array<i64: 2>, scalar_prefetch = 0 : i64, scratch_operands = 0 : i64, tpu.core_type = #tpu.core_type<tc>, window_params = [{pipeline_mode = #tpu.pipeline_mode<synchronous>, transform_indices = @transform_0, window_bounds = array<i64: 8, 128>}, {transform_indices = @transform_1, window_bounds = array<i64: 128, 128>}, {transform_indices = @transform_2, window_bounds = array<i64: 2, 128>}, {transform_indices = @transform_3, window_bounds = array<i64: 128, 128>}, {pipeline_mode = #tpu.pipeline_mode<synchronous>, transform_indices = @transform_4, window_bounds = array<i64: 1, 128>}, {pipeline_mode = #tpu.pipeline_mode<synchronous>, transform_indices = @transform_5, window_bounds = array<i64: 8, 128>}]} {
    %c0_i32 = arith.constant 0 : i32
    %0 = arith.cmpi eq, %arg0, %c0_i32 : i32
    %1 = arith.extui %0 : i1 to i32
    %c0_i32_0 = arith.constant 0 : i32
    %2 = arith.cmpi ne, %1, %c0_i32_0 : i32
    scf.if %2 {
      %cst_21 = arith.constant 0.000000e+00 : f32
      %38 = vector.broadcast %cst_21 : f32 to vector<8x128xf32>
      %c0_22 = arith.constant 0 : index
      %c0_23 = arith.constant 0 : index
      %39 = vector.load %arg6[%c0_22, %c0_23] : memref<8x128xf32, #tpu.memory_space<vmem>>, vector<8x128xf32>
      tpu.vector_store %arg6[%c0_22, %c0_23], %38 {strides = array<i32>} : memref<8x128xf32, #tpu.memory_space<vmem>>, vector<8x128xf32>,
    } else {
    }
    %c0 = arith.constant 0 : index
    %c0_1 = arith.constant 0 : index
    %3 = vector.load %arg1[%c0, %c0_1] : memref<8x128xbf16, #tpu.memory_space<vmem>>, vector<8x128xbf16>
    %c0_2 = arith.constant 0 : index
    %c0_3 = arith.constant 0 : index
    %4 = vector.load %arg2[%c0_2, %c0_3] : memref<128x128xbf16, #tpu.memory_space<vmem>>, vector<128x128xbf16>
    %cst = arith.constant dense<0.000000e+00> : vector<8x128xf32>
    %5 = tpu.matmul %3, %4, %cst {dimension_numbers = #tpu.dot_dimension_numbers<[1], [0], [0], [1], [0, 0, 1, 1], [], []>} : vector<8x128xbf16>, vector<128x128xbf16>, vector<8x128xf32> -> vector<8x128xf32>
    %cst_4 = arith.constant dense<0.000000e+00> : vector<128xf32>
    %6 = vector.multi_reduction <add>, %5, %cst_4 [0] : vector<8x128xf32> to vector<128xf32>
    %7 = vector.shape_cast %6 : vector<128xf32> to vector<1x128xf32>
    %cst_5 = arith.constant 8.000000e+00 : f32
    %8 = vector.broadcast %cst_5 : f32 to vector<1x128xf32>
    %9 = arith.divf %7, %8 : vector<1x128xf32>
    %10 = vector.broadcast %9 : vector<1x128xf32> to vector<8x128xf32>
    %11 = arith.subf %5, %10 : vector<8x128xf32>
    %12 = arith.mulf %11, %11 : vector<8x128xf32>
    %cst_6 = arith.constant dense<0.000000e+00> : vector<128xf32>
    %13 = vector.multi_reduction <add>, %12, %cst_6 [0] : vector<8x128xf32> to vector<128xf32>
    %14 = vector.shape_cast %13 : vector<128xf32> to vector<1x128xf32>
    %cst_7 = arith.constant 8.000000e+00 : f32
    %15 = vector.broadcast %cst_7 : f32 to vector<1x128xf32>
    %16 = arith.divf %14, %15 : vector<1x128xf32>
    %cst_8 = arith.constant 9.99999974E-6 : f32
    %17 = vector.broadcast %cst_8 : f32 to vector<1x128xf32>
    %18 = arith.addf %16, %17 : vector<1x128xf32>
    %19 = math.rsqrt %18 : vector<1x128xf32>
    %c0_9 = arith.constant 0 : index
    %c0_10 = arith.constant 0 : index
    %20 = vector.load %arg3[%c0_9, %c0_10] : memref<2x128xf32, #tpu.memory_space<vmem>>, vector<1x128xf32>
    %21 = arith.mulf %19, %20 : vector<1x128xf32>
    %22 = vector.broadcast %21 : vector<1x128xf32> to vector<8x128xf32>
    %23 = arith.mulf %11, %22 : vector<8x128xf32>
    %c1 = arith.constant 1 : index
    %c0_11 = arith.constant 0 : index
    %24 = vector.load %arg3[%c1, %c0_11] : memref<2x128xf32, #tpu.memory_space<vmem>>, vector<1x128xf32>
    %25 = vector.broadcast %24 : vector<1x128xf32> to vector<8x128xf32>
    %26 = arith.addf %23, %25 : vector<8x128xf32>
    %cst_12 = arith.constant 0.000000e+00 : f32
    %27 = vector.broadcast %cst_12 : f32 to vector<8x128xf32>
    %28 = arith.maximumf %26, %27 : vector<8x128xf32>
    %c0_13 = arith.constant 0 : index
    %c0_14 = arith.constant 0 : index
    %29 = vector.load %arg6[%c0_13, %c0_14] : memref<8x128xf32, #tpu.memory_space<vmem>>, vector<8x128xf32>
    %30 = arith.truncf %28 : vector<8x128xf32> to vector<8x128xbf16>
    %c0_15 = arith.constant 0 : index
    %c0_16 = arith.constant 0 : index
    %31 = vector.load %arg4[%c0_15, %c0_16] : memref<128x128xbf16, #tpu.memory_space<vmem>>, vector<128x128xbf16>
    %cst_17 = arith.constant dense<0.000000e+00> : vector<8x128xf32>
    %32 = tpu.matmul %30, %31, %cst_17 {dimension_numbers = #tpu.dot_dimension_numbers<[1], [0], [0], [1], [0, 0, 1, 1], [], []>} : vector<8x128xbf16>, vector<128x128xbf16>, vector<8x128xf32> -> vector<8x128xf32>
    %33 = arith.addf %29, %32 : vector<8x128xf32>
    %c0_18 = arith.constant 0 : index
    %c0_19 = arith.constant 0 : index
    %34 = vector.load %arg6[%c0_18, %c0_19] : memref<8x128xf32, #tpu.memory_space<vmem>>, vector<8x128xf32>
    tpu.vector_store %arg6[%c0_18, %c0_19], %33 {strides = array<i32>} : memref<8x128xf32, #tpu.memory_space<vmem>>, vector<8x128xf32>,
    %c1_i32 = arith.constant 1 : i32
    %35 = arith.cmpi eq, %arg0, %c1_i32 : i32
    %36 = arith.extui %35 : i1 to i32
    %c0_i32_20 = arith.constant 0 : i32
    %37 = arith.cmpi ne, %36, %c0_i32_20 : i32
    scf.if %37 {
      %c0_21 = arith.constant 0 : index
      %c0_22 = arith.constant 0 : index
      %38 = vector.load %arg6[%c0_21, %c0_22] : memref<8x128xf32, #tpu.memory_space<vmem>>, vector<8x128xf32>
      %c0_23 = arith.constant 0 : index
      %c0_24 = arith.constant 0 : index
      %39 = vector.load %arg5[%c0_23, %c0_24] : memref<1x128xf32, #tpu.memory_space<vmem>>, vector<1x128xf32>
      %40 = vector.broadcast %39 : vector<1x128xf32> to vector<8x128xf32>
      %41 = arith.addf %38, %40 : vector<8x128xf32>
      %c0_25 = arith.constant 0 : index
      %c0_26 = arith.constant 0 : index
      %42 = vector.load %arg6[%c0_25, %c0_26] : memref<8x128xf32, #tpu.memory_space<vmem>>, vector<8x128xf32>
      tpu.vector_store %arg6[%c0_25, %c0_26], %41 {strides = array<i32>} : memref<8x128xf32, #tpu.memory_space<vmem>>, vector<8x128xf32>,
    } else {
    }
    return
  }
  func.func @transform_0(%arg0: i32) -> (i32, i32) {
    %c0_i32 = arith.constant 0 : i32
    %c0_i32_0 = arith.constant 0 : i32
    %c0_i32_1 = arith.constant 0 : i32
    return %c0_i32, %c0_i32_0 : i32, i32
  }
  func.func @transform_1(%arg0: i32) -> (i32, i32) {
    %c0_i32 = arith.constant 0 : i32
    %c0_i32_0 = arith.constant 0 : i32
    return %c0_i32, %arg0 : i32, i32
  }
  func.func @transform_2(%arg0: i32) -> (i32, i32) {
    %c0_i32 = arith.constant 0 : i32
    %c0_i32_0 = arith.constant 0 : i32
    return %c0_i32, %arg0 : i32, i32
  }
  func.func @transform_3(%arg0: i32) -> (i32, i32) {
    %c0_i32 = arith.constant 0 : i32
    %c0_i32_0 = arith.constant 0 : i32
    return %arg0, %c0_i32 : i32, i32
  }
  func.func @transform_4(%arg0: i32) -> (i32, i32) {
    %c0_i32 = arith.constant 0 : i32
    %c0_i32_0 = arith.constant 0 : i32
    %c0_i32_1 = arith.constant 0 : i32
    return %c0_i32, %c0_i32_0 : i32, i32
  }
  func.func @transform_5(%arg0: i32) -> (i32, i32) {
    %c0_i32 = arith.constant 0 : i32
    %c0_i32_0 = arith.constant 0 : i32
    %c0_i32_1 = arith.constant 0 : i32
    return %c0_i32, %c0_i32_0 : i32, i32
  }
}

</mosaic_0001>

<bundles_post_ra>
// kernel: soda_predictor_forward.1
= control target key start
LH: loop header
LB: loop body
LE: loop exit
PB: predicated region body
PF: predicated region fallthrough
CT: control target
= control target key end

     0   :  { %10 = vsyncpa [#allocation3], 0  ;;  %s1090_s0 = inlined_call_operand.vmem [shape: bf16[8,128], index: 0, kind: input, shape index: {}]   ;;  %s1091_s1 = inlined_call_operand.hbm [shape: bf16[128,256], index: 1, kind: input, shape index: {}]   ;;  %s1092_s2 = inlined_call_operand.vmem [shape: f32[2,256], index: 2, kind: input, shape index: {}]   ;;  %s1093_s3 = inlined_call_operand.hbm [shape: bf16[256,128], index: 3, kind: input, shape index: {}]   ;;  %s1094_s4 = inlined_call_operand.vmem [shape: f32[1,128], index: 4, kind: input, shape index: {}]   ;;  %s1095_s5 = inlined_call_operand.hbm [shape: f32[8,128], index: 5, kind: output, shape index: {}]  }
   0x1   :  { %12 = vsyncpa [#allocation3 + $0x1], 0 }
   0x2   :  { %13 = vsyncpa [#allocation6], 0 }
   0x3   :  { %15 = vsyncpa [#allocation6 + $0x1], 0 }
   0x4   :  { %16 = vsyncpa [#allocation4], 0  ;;  %s932_s18 = smov 0   ;;  %s934_s19 = smov 0  }
   0x5   :  { %s936_s20 = smov 0   ;;  %s938_s21 = smov 0  }
   0x6 LB: > { %s951_s22 = sadd.s32 4294967295, %s894_s21   ;;  %s954_s23 = sadd.s32 1, %s894_s21   ;;  %s894_s21 = sphi %s938_s21, %s1103_s21   ;;  %s890_s20 = sphi %s936_s20, %s1102_s20   ;;  %s886_s19 = sphi %s934_s19, %s1101_s19   ;;  %s882_s18 = sphi %s932_s18, %s1100_s18  }
   0x7   : > { %s47_s24 = ssub.s32 %s894_s21, %s954_s23  ;;  %s50_s25 = sadd.s32 1, %s890_s20 }
   0x8   : > { %p48_p0 = scmp.eq.s32.totalorder %s47_s24, 0  ;;  %p57_p1 = scmp.ne.s32.totalorder %s890_s20, %s886_s19 }
   0x9   : > { %p58_p2 = scmp.eq.s32.totalorder %s894_s21, 0  ;;  %p63_p3 = scmp.ne.s32.totalorder %s886_s19, %s882_s18 }
   0xa   : > { %s964_s26 = scalar_select %p48_p0, %s890_s20, %s50_s25  }
   0xb   : > { %p966_p4 = por %p58_p2, %p57_p1  ;;  %p64_p5 = scmp.eq.s32.totalorder %s951_s22, 0 }
   0xc   : > { %p717_p6 = scmp.lt.s32.totalorder %s894_s21, 2  ;;  %s977_s29 = sand.u32 1, %s890_s20  }
   0xd   : > { %p972_p7 = por %p64_p5, %p63_p3  ;;  %s606_s30 = sshll.u32 %s977_s29, 6 }
   0xe   : > { %s607_s6 = sshll.u32 %s894_s21, 2  ;;  %s191_s10 = scalar_lea.vmem [#allocation2], %s606_s30 }
   0xf   : > { %s195_s9 = scalar_lea.hbm %s1091_s1, %s607_s6  ;;  %s198_s11 = sshll.u32 %s191_s10, 4  ;;  %s199_s11 = int_to_ptr.vmem [resolvable:$true] %s198_s11 }
  0x10   : > { %s196_s12 = sshll.u32 %s195_s9, 4  ;;  %p988_p8 = pnand %p717_p6, %p966_p4  ;;  %s197_s12 = int_to_ptr.hbm [resolvable:$true] %s196_s12 }
  0x11   : > { %s188_s14 = scalar_lea.sflag [#allocation3], %s977_s29  ;;  %s764_s15 = sshra.s32 %s197_s12, 4  ;;  %s765_s15 = int_to_ptr.hbm [resolvable:$true] %s764_s15 }
  0x12   : > { %s766_s16 = scalar_lea.hbm %s765_s15, 64  ;;  %p768_p10 = pneg %p988_p8 }
  0x13   : > { %p767_p9 = scmp.ne.s32.totalorder %s765_s15, %s766_s16  ;;  %s771_s24 = scalar_lea.hbm %s1091_s1, 128 }
  0x14   : > { %p772_p13 = scmp.lt.s32.totalorder %s765_s15, %s1091_s1  ;;  %p773_p0 = scmp.lt.s32.totalorder %s771_s24, %s766_s16 }
  0x15   : > { %p769_p11 = pnand %p768_p10, %p767_p9 }
  0x16   : > { %p774_p1 = por %p773_p0, %p772_p13 }
  0x17   : > { %p770_p12 = pneg %p769_p11 }
  0x19   : > { %p775_p2 = pnand %p774_p1, %p770_p12 }
  0x1b   : > { %778 = shalt.err (!%p775_p2)
}
  0x1c   : > { %s896_s6 = smov 128   ;;  %s897_s7 = smov 64  }
  0x1d   : > { %s898_s8 = smov 4   ;;  %p611_p3 = scmp.ge.s32.totalorder %s894_s21, 1 }
  0x1e   : > { %713 = dma.hbm_to_vmem [thread:$0]  (!%p988_p8), %s197_s12, 1024, %s199_s11, %s188_s14, %s896_s6, %s897_s7, %s898_s8  }
  0x1f   : > { %p235_p4 = scmp.lt.s32.totalorder %s894_s21, 3  ;;  %s685_s10 = sshll.u32 %s894_s21, 6 }
  0x20   : > { %s224_s17 = scalar_lea.hbm %s1093_s3, %s685_s10  ;;  %s219_s18 = scalar_lea.vmem [#allocation5], %s606_s30 }
  0x21   : > { %p1010_p5 = pnand %p611_p3, %p235_p4  ;;  %s227_s24 = sshll.u32 %s219_s18, 4  ;;  %s228_s24 = int_to_ptr.vmem [resolvable:$true] %s227_s24 }
  0x22   : > { %s225_s25 = sshll.u32 %s224_s17, 4  ;;  %s216_s27 = scalar_lea.sflag [#allocation6], %s977_s29  ;;  %s226_s25 = int_to_ptr.hbm [resolvable:$true] %s225_s25 }
  0x23   : > { %s794_s11 = sshra.s32 %s226_s25, 4  ;;  %s801_s6 = scalar_lea.hbm %s1093_s3, 128  ;;  %s795_s11 = int_to_ptr.hbm [resolvable:$true] %s794_s11 }
  0x24   : > { %s796_s12 = scalar_lea.hbm %s795_s11, 64  ;;  %p802_p12 = scmp.lt.s32.totalorder %s795_s11, %s1093_s3 }
  0x25   : > { %p797_p6 = scmp.ne.s32.totalorder %s795_s11, %s796_s12  ;;  %p803_p13 = scmp.lt.s32.totalorder %s801_s6, %s796_s12 }
  0x27   : > { %p799_p9 = pnand %p797_p6, %p768_p10  ;;  %p804_p0 = por %p803_p13, %p802_p12 }
  0x29   : > { %p800_p11 = pneg %p799_p9 }
  0x2b   : > { %p805_p1 = pnand %p804_p0, %p800_p11 }
  0x2d   : > { %808 = shalt.err (!%p805_p1)
}
  0x2e   : > { %716 = dma.hbm_to_vmem [thread:$0]  (!%p988_p8), %s226_s25, 1024, %s228_s24, %s216_s27, %s897_s7, %s897_s7, %s898_s8  }
  0x2f   : > { %239 = sbr.rel (%p1010_p5) target bundleno = 431 (0x1af), region = 40  ;;  %s241_s29 = sand.u32 (!%p1010_p5), 1, %s886_s19  }
  0x30   : > { %s612_s30 = sshll.u32 (!%p1010_p5), %s241_s29, 6  ;;  %s242_s16 = scalar_lea.sflag (!%p1010_p5), [#allocation3], %s241_s29 }
  0x31   : > { %s245_s17 = scalar_lea.vmem (!%p1010_p5), [#allocation2], %s612_s30 }
  0x34   : > { %869 = dma.done.wait (%p972_p7), %s242_s16, 1024  }
  0x35   : > { %871 = vsyncadd (%p972_p7), %s242_s16, 4294966272  ;;  %s252_s13 = scalar_lea.sflag [#allocation6], %s241_s29  ;;  %s1042_s18 = scalar_lea.vmem [#allocation5], %s612_s30 }
  0x36   : > { %873 = dma.done.wait (%p972_p7), %s252_s13, 1024  }
  0x37   : > { %875 = vsyncadd (%p972_p7), %s252_s13, 4294966272  ;;  %p287_p8 = scmp.lt.s32.totalorder %s951_s22, 1  ;;  %p615_p10 = scmp.ne.s32.totalorder %s951_s22, 0 }
  0x39   : > { %s288_s7 = scalar_select %p287_p8, %s951_s22, 1 }
  0x3a   : > { %295 = sbr.rel (%p615_p10) target bundleno = 65 (0x41), region = 52 }
  0x3b   : > { %s614_s8 = sshll.u32 %s288_s7, 1 }
  0x3c   : > { %s1053_s25 = scalar_lea.vmem %s1092_s2, %s614_s8 }
  0x3f   : > { %v899_v0 = vmov 0.0  }
  0x40   : > { %296 = vst [vmem:[#allocation7] sm:$0xff] %v899_v0 }
  0x41 PF: > { %v693_v1 = vld [vmem:[%s245_s17 + $0x38] sm:$0xff]  ;;  %v692_v2 = vld [vmem:[%s245_s17 + $0x30] sm:$0xff]  ;;  %v691_v3 = vld [vmem:[%s245_s17 + $0x28] sm:$0xff]  ;;  %v900_v10 = vmov 8.0   ;;  %p680_p7 = scmp.ne.s32.totalorder %s951_s22, 1 }
  0x42   : > { %362 = vmatpush.bf16.msra.mxu0 %v693_v1  ;;  %v690_v4 = vld [vmem:[%s245_s17 + $0x20] sm:$0xff]  ;;  %v689_v5 = vld [vmem:[%s245_s17 + $0x18] sm:$0xff]  ;;  %v688_v6 = vld [vmem:[%s245_s17 + $0x10] sm:$0xff]  ;;  %759 = vrcp.f32 %v900_v10 }
  0x43   : > { %v687_v7 = vld [vmem:[%s245_s17 + $0x8] sm:$0xff]  ;;  %v686_v8 = vld [vmem:[%s245_s17] sm:$0xff]  ;;  %v701_v15 = vld [vmem:[%s1042_s18 + $0x38] sm:$0xff] }
  0x44   : > { %v297_v9 = vld [vmem:[%s1090_s0] sm:$0xf]  ;;  %483 = vmatpush.bf16.msra.mxu1 %v701_v15  ;;  %v700_v19 = vld [vmem:[%s1042_s18 + $0x30] sm:$0xff]  ;;  %v699_v24 = vld [vmem:[%s1042_s18 + $0x28] sm:$0xff] }
  0x45   : > { %v698_v28 = vld [vmem:[%s1042_s18 + $0x20] sm:$0xff]  ;;  %v697_v30 = vld [vmem:[%s1042_s18 + $0x18] sm:$0xff]  ;;  %v696_v33 = vld [vmem:[%s1042_s18 + $0x10] sm:$0xff] }
  0x46   : > { %363 = vmatpush.bf16.msra.mxu0 %v692_v2  ;;  %v695_v36 = vld [vmem:[%s1042_s18 + $0x8] sm:$0xff]  ;;  %v694_v39 = vld [vmem:[%s1042_s18] sm:$0xff] }
  0x47   : > { %v409_v50 = vld [vmem:[%s1053_s25] sm:$0x1]  ;;  %v758_v54 = vld [vmem:[%s1053_s25 + $0x1] ss:$0 sm:$0xff] }
  0x48   : > { %v760_v11 = vpop.eup %759  ;;  %484 = vmatpush.bf16.msra.mxu1 %v700_v19  ;;  %v417_v59 = vld [vmem:[#allocation7] sm:$0xff] }
  0x49   : > { %v382_v12 = vmul.f32 8.0, %v760_v11  ;;  %vm386_vm0 = vweird.f32 %v760_v11 }
  0x4a   : > { %364 = vmatpush.bf16.msra.mxu0 %v691_v3 }
  0x4b   : > { %v383_v13 = vsub.f32 1.0, %v382_v12 }
  0x4c   : > { %485 = vmatpush.bf16.msra.mxu1 %v699_v24 }
  0x4d   : > { %v384_v17 = vmul.f32 %v760_v11, %v383_v13 }
  0x4e   : > { %365 = vmatpush.bf16.msra.mxu0 %v690_v4 }
  0x4f   : > { %v385_v21 = vadd.f32 %v760_v11, %v384_v17 }
  0x50   : > { %486 = vmatpush.bf16.msra.mxu1 %v698_v28 }
  0x51   : > { %v387_v26 = vsel %vm386_vm0, %v760_v11, %v385_v21 }
  0x52   : > { %366 = vmatpush.bf16.msra.mxu0 %v689_v5 }
  0x54   : > { %487 = vmatpush.bf16.msra.mxu1 %v697_v30 }
  0x56   : > { %367 = vmatpush.bf16.msra.mxu0 %v688_v6 }
  0x58   : > { %488 = vmatpush.bf16.msra.mxu1 %v696_v33 }
  0x5a   : > { %368 = vmatpush.bf16.msra.mxu0 %v687_v7 }
  0x5c   : > { %489 = vmatpush.bf16.msra.mxu1 %v695_v36 }
  0x5e   : > { %369 = vmatpush.bf16.msra.mxu0 %v686_v8 }
  0x60   : > { %490 = vmatpush.bf16.msra.mxu1 %v694_v39 }
  0x61   : > { %370 = vmatmul.bf16.vlgmr.msra.gmra.mxu0 %v297_v9 }
  0xde   : > { %v371_v14 = vpop.f32.mrf.mxu0 }
  0xdf   : > { %v375_v16 = vrot.slane %v371_v14, 4 }
  0xe1   : > { %v376_v18 = vadd.f32 %v375_v16, %v371_v14 }
  0xe3   : > { %v377_v20 = vrot.slane %v376_v18, 2 }
  0xe5   : > { %v378_v22 = vadd.f32 %v377_v20, %v376_v18 }
  0xe6   : > { %v373_v23 = vpop.f32.mrf.mxu0 }
  0xe7   : > { %v379_v25 = vrot.slane %v378_v22, 1 }
  0xe9   : > { %v380_v27 = vadd.f32 %v379_v25, %v378_v22 }
  0xeb   : > { %v388_v29 = vmul.f32 %v387_v26, %v380_v27 }
  0xed   : > { %v389_v31 = vsub.f32 %v371_v14, %v388_v29 }
  0xef   : > { %v390_v32 = vmul.f32 %v389_v31, %v389_v31 }
  0xf1   : > { %v391_v34 = vrot.slane %v390_v32, 4 }
  0xf3   : > { %v392_v35 = vadd.f32 %v391_v34, %v390_v32 }
  0xf5   : > { %v393_v37 = vrot.slane %v392_v35, 2 }
  0xf7   : > { %v394_v38 = vadd.f32 %v393_v37, %v392_v35 }
  0xf9   : > { %v395_v40 = vrot.slane %v394_v38, 1 }
  0xfb   : > { %v396_v41 = vadd.f32 %v395_v40, %v394_v38 }
  0xfd   : > { %v397_v42 = vmul.f32 %v396_v41, %v387_v26 }
  0xff   : > { %v398_v43 = vadd.f32 1e-05, %v397_v42 }
 0x101   : > { %761 = vrsqrt.f32 %v398_v43  ;;  %vm405_vm2 = vweird.f32 %v398_v43 }
 0x107   : > { %v762_v44 = vpop.eup %761 }
 0x108   : > { %v400_v45 = vmul.f32 %v762_v44, %v398_v43  ;;  %vm406_vm1 = vweird.f32 %v762_v44 }
 0x109   : > { %vm407_vm3 = vmor %vm405_vm2, %vm406_vm1 }
 0x10a   : > { %v401_v46 = vmul.f32 %v762_v44, %v400_v45 }
 0x10c   : > { %v402_v47 = vmul.f32 0.5, %v401_v46 }
 0x10e   : > { %v403_v48 = vsub.f32 1.5, %v402_v47 }
 0x110   : > { %v404_v49 = vmul.f32 %v762_v44, %v403_v48 }
 0x112   : > { %v408_v51 = vsel %vm407_vm3, %v762_v44, %v404_v49 }
 0x113   : > { %v410_v52 = vmul.f32 %v409_v50, %v408_v51 }
 0x115   : > { %v411_v53 = vperm.slane %v410_v52, 0 }
 0x117   : > { %v412_v55 = vmul.f32 %v411_v53, %v389_v31 }
 0x119   : > { %v415_v56 = vadd.f32 %v758_v54, %v412_v55 }
 0x11b   : > { %v416_v57 = vmax.f32 %v415_v56, 0.0 }
 0x11d   : > { %v418_v58 = vpack.c.bf16 %v416_v57, %v416_v57 }
 0x11f   : > { %491 = vmatmul.bf16.vlgmr.msra.gmra.mxu1 %v418_v58 }
 0x19c   : > { %v492_v60 = vpop.f32.mrf.mxu1 }
 0x19d   : > { %v496_v61 = vadd.f32 %v492_v60, %v417_v59 }
 0x19f   : > { %497 = vst [vmem:[#allocation7] sm:$0xff] %v496_v61 }
 0x1a0   : > { %501 = sbr.rel (%p680_p7) target bundleno = 426 (0x1aa), region = 56 }
 0x1a4   : > { %v494_v62 = vpop.f32.mrf.mxu1 }
 0x1a5   : > { %v763_v0 = vld [vmem:[%s1094_s4] ss:$0 sm:$0xff] }
 0x1a6   : > { %v502_v63 = vld [vmem:[#allocation7] sm:$0xff] }
 0x1a7   : > { %v507_v1 = vadd.f32 %v763_v0, %v502_v63 }
 0x1a9   : > { %508 = vst [vmem:[#allocation7] sm:$0xff] %v507_v1 }
 0x1aa PF: > { %p718_p2 = scmp.eq.s32.totalorder %s951_s22, 1  ;;  %s901_s21 = smov [#allocation7]  }
 0x1ab   : > { %s515_s14 = sshll.u32 %s901_s21, 4  ;;  %s517_s15 = sshll.u32 %s1095_s5, 4  ;;  %s516_s14 = int_to_ptr.vmem [resolvable:$true] %s515_s14  ;;  %s518_s15 = int_to_ptr.hbm [resolvable:$true] %s517_s15 }
 0x1ac   : > { %707 = dma.vmem_to_hbm [thread:$0]  (%p718_p2), %s516_s14, 128, %s518_s15, [#allocation4]  }
 0x1ad   : > { %877 = dma.done.wait (%p718_p2), [#allocation4], 128  }
 0x1ae   : > { %879 = vsyncadd (%p718_p2), [#allocation4], 4294967168 }
 0x1af PF: > { %p19_p3 = scmp.ge.s32.totalorder %s954_s23, 4   ;;  %s1100_s18 = smov %s886_s19 }
 0x1b0   : > { %s1101_s19 = smov %s890_s20  ;;  %s1102_s20 = smov %s964_s26 }
 0x1b1   : > { %s1103_s21 = smov %s954_s23  ;;  %21 = sbr.rel (!%p19_p3) target bundleno = 6 (0x6), region = 101 }
 0x1b6   :  { %531 = vsyncpa [#allocation3], 1 }
 0x1b7   :  { %533 = vsyncpa [#allocation3 + $0x1], 1 }
 0x1b8   :  { %534 = vsyncpa [#allocation6], 1 }
 0x1b9   :  { %536 = vsyncpa [#allocation6 + $0x1], 1 }
 0x1ba   :  { %537 = vsyncpa [#allocation4], 1 }
 0x1bb   :  { %539 = vsyncpa [#allocation4 + $0x1], 1 }

</bundles_post_ra>
